<compile_context>
chip_gen: v7x
topology: tpu7x:2x2x1
jax: 0.10.0
libtpu: 0.0.40
codegen_flags: <defaults>
</compile_context>

<pallas_src>
import functools

import jax
import jax.numpy as jnp
from jax import lax
from jax.experimental import pallas as pl
from jax.experimental.pallas import tpu as pltpu

_EPS = 1e-5
_ROLL_SIGN_CACHE = {}


def _round_up(x, m):
    return (x + m - 1) // m * m


def _roll_left_sign():
    """Sign s so pltpu.roll(x, (s*k) % n, axis=-1)[..., i] == x[..., (i+k) % n].

    The rotation direction convention of pltpu.roll is probed once on-device
    with a tiny kernel, so the main kernels are correct under either
    convention.  (Cached; the probe only runs on the first call.)
    """
    if "sign" not in _ROLL_SIGN_CACHE:
        def probe(x_ref, o_ref):
            o_ref[...] = pltpu.roll(x_ref[...], 127, axis=1)

        lane_iota = jnp.tile(jnp.arange(128, dtype=jnp.int32)[None, :], (8, 1))
        out = pl.pallas_call(
            probe, out_shape=jax.ShapeDtypeStruct((8, 128), jnp.int32),
        )(lane_iota)
        v = int(out[0, 0])
        if v == 1:        # jnp.roll convention: roll(x, t)[i] == x[i - t]
            _ROLL_SIGN_CACHE["sign"] = -1
        elif v == 127:    # opposite convention: roll(x, t)[i] == x[i + t]
            _ROLL_SIGN_CACHE["sign"] = 1
        else:
            raise RuntimeError(f"unexpected pltpu.roll probe value: {v}")
    return _ROLL_SIGN_CACHE["sign"]


def _parity_conv(x_ref, mask_ref, w_ref, *, wp, roll_sign):
    """Shared per-tile compute: 4 parity views + packed transposed-conv matmul.

    x_ref:    (Cin, TM)        bf16 slab tile (per-image zero-padded layout)
    mask_ref: (1, TM)          f32 validity mask (1 at real h<H, w<W positions)
    w_ref:    (4, 4*Cout, Cin) f32 per-view weight blocks
    returns y (4*Cout, TM) f32 and the 4 (Cin, TM) f32 views.
    """
    x00 = x_ref[...].astype(jnp.float32)
    m = mask_ref[...]
    lanes = x00.shape[-1]

    def shift_left(v, s):            # result[..., i] == v[..., i + s] (cyclic)
        return pltpu.roll(v, (roll_sign * s) % lanes, axis=1)

    # Neighbour shifts: +1 lane == (h, w+1); +wp lanes == (h+1, w).  The
    # per-image (H+1)x(W+1) zero padding supplies the out-of-range zeros at
    # real positions; the mask kills wrapped-in garbage at pad positions so
    # they contribute nothing to the matmul output or the BN statistics.
    x01 = shift_left(x00, 1) * m
    x10 = shift_left(x00, wp) * m
    x11 = shift_left(x00, wp + 1) * m

    # One (4*Cout, Cin) matmul per view (parity rows packed on sublanes).
    y = jnp.dot(w_ref[0], x00, preferred_element_type=jnp.float32)
    y = y + jnp.dot(w_ref[1], x01, preferred_element_type=jnp.float32)
    y = y + jnp.dot(w_ref[2], x10, preferred_element_type=jnp.float32)
    y = y + jnp.dot(w_ref[3], x11, preferred_element_type=jnp.float32)
    return y, (x00, x01, x10, x11)


def _stats_kernel(x_ref, mask_ref, w_ref, xsum_ref, ysq_ref, *, wp, roll_sign):
    # Pass 1: the conv tile stays on-chip; only tiny partial stats go to HBM.
    y, views = _parity_conv(x_ref, mask_ref, w_ref, wp=wp, roll_sign=roll_sign)
    ysq_ref[0] = jnp.sum(y * y, axis=1, keepdims=True)              # (4*Cout, 1)
    for j in range(4):                                              # first moment
        xsum_ref[0, j] = jnp.sum(views[j], axis=1, keepdims=True)   # (Cin, 1)


def _bn_relu_kernel(x_ref, mask_ref, w_ref, scale_ref, shift_ref, o_ref,
                    *, wp, roll_sign):
    # Pass 2: recompute the cheap matmul (MXU has idle headroom) + BN + ReLU.
    y, _ = _parity_conv(x_ref, mask_ref, w_ref, wp=wp, roll_sign=roll_sign)
    o_ref[...] = jnp.maximum(y * scale_ref[...] + shift_ref[...], 0.0)


def based_module_4(x_nchw, w, b, gamma, beta, *,
                   max_tile_lanes=8192, slab_dtype=jnp.bfloat16):
    """Forward of basedModule_4.

    x_nchw: (N, Cin, H, W) float32
    w:      (Cin, Cout, 3, 3)  -- PyTorch ConvTranspose2d weight layout
    b:      (Cout,)            -- unused: cancels under train-mode BatchNorm
    gamma, beta: (Cout,)       -- BatchNorm2d affine params
    returns (N, Cout, 2H, 2W) float32
    """
    del b  # constant pre-BN bias is removed by the batch-mean subtraction

    N, Cin, H, W = x_nchw.shape
    Cout = w.shape[1]
    hp, wp = H + 1, W + 1
    img_len = hp * wp
    imgp = _round_up(img_len, 128)            # lane-dense per-image stride
    c4o = 4 * Cout

    # ---- channel-major, per-image zero-padded activation slab (bf16) --------
    xpad = jnp.pad(x_nchw.astype(jnp.float32), ((0, 0), (0, 0), (0, 1), (0, 1)))
    slab = jnp.transpose(xpad, (1, 0, 2, 3)).reshape(Cin, N, img_len)
    slab = jnp.pad(slab, ((0, 0), (0, 0), (0, imgp - img_len)))
    slab = slab.reshape(Cin, N * imgp).astype(slab_dtype)

    # validity mask: 1 at real (h < H, w < W) positions of each image chunk
    q = jnp.arange(imgp, dtype=jnp.int32)
    valid = ((q < img_len) & (q % wp != W) & (q // wp != H)).astype(jnp.float32)

    # ---- whole-image tiles; keep >= 2 grid steps for the v7x megacore -------
    k = 1
    for cand in range(1, N + 1):
        if N % cand:
            continue
        if cand * imgp > max(max_tile_lanes, imgp):
            break
        if N >= 2 and N // cand < 2:
            break
        k = cand
    tm = k * imgp
    n_tiles = N // k
    mask = jnp.tile(valid, k).reshape(1, tm)

    # ---- per-view packed weights (4, 4*Cout, Cin); parity rows [ee|eo|oe|oo] -
    wf = w.astype(jnp.float32)

    def tap_t(kh, kw):                        # (Cout, Cin)
        return wf[:, :, kh, kw].T

    Z = jnp.zeros((Cout, Cin), jnp.float32)
    w_stk = jnp.stack([
        jnp.concatenate([tap_t(1, 1), tap_t(1, 2), tap_t(2, 1), tap_t(2, 2)], 0),
        jnp.concatenate([Z,           tap_t(1, 0), Z,           tap_t(2, 0)], 0),
        jnp.concatenate([Z,           Z,           tap_t(0, 1), tap_t(0, 2)], 0),
        jnp.concatenate([Z,           Z,           Z,           tap_t(0, 0)], 0),
    ], axis=0)                                # (4, 4*Cout, Cin)

    roll_sign = _roll_left_sign()
    kern_kw = dict(wp=wp, roll_sign=roll_sign)
    cparams = pltpu.CompilerParams(dimension_semantics=("parallel",))

    x_spec = pl.BlockSpec((Cin, tm), lambda i: (0, i))
    m_spec = pl.BlockSpec((1, tm), lambda i: (0, 0))
    w_spec = pl.BlockSpec((4, c4o, Cin), lambda i: (0, 0, 0))

    # ---- pass 1: stats only (conv result never touches HBM) -----------------
    xsum_t, ysq_t = pl.pallas_call(
        functools.partial(_stats_kernel, **kern_kw),
        out_shape=(jax.ShapeDtypeStruct((n_tiles, 4, Cin, 1), jnp.float32),
                   jax.ShapeDtypeStruct((n_tiles, c4o, 1), jnp.float32)),
        grid=(n_tiles,),
        in_specs=[x_spec, m_spec, w_spec],
        out_specs=(pl.BlockSpec((1, 4, Cin, 1), lambda i: (i, 0, 0, 0)),
                   pl.BlockSpec((1, c4o, 1), lambda i: (i, 0, 0))),
        compiler_params=cparams,
    )(slab, mask, w_stk)

    # ---- finalize BN stats (tiny, plain JAX) ---------------------------------
    xsum = jnp.sum(xsum_t, axis=0)[..., 0]                      # (4, Cin)
    s1 = jnp.einsum('voc,vc->o', w_stk, xsum)                   # sum(y) by linearity
    s1 = s1.reshape(4, Cout).sum(axis=0)                        # (Cout,)
    s2 = jnp.sum(ysq_t, axis=(0, 2)).reshape(4, Cout).sum(axis=0)
    n_total = jnp.float32(4 * N * H * W)                        # = N*(2H)*(2W)
    mean = s1 / n_total
    var = s2 / n_total - mean * mean
    scale_c = gamma.astype(jnp.float32) * lax.rsqrt(var + _EPS)
    shift_c = beta.astype(jnp.float32) - mean * scale_c
    scale4 = jnp.tile(scale_c, 4).reshape(c4o, 1)
    shift4 = jnp.tile(shift_c, 4).reshape(c4o, 1)

    # ---- pass 2: recompute conv, apply BN + ReLU -----------------------------
    y_out = pl.pallas_call(
        functools.partial(_bn_relu_kernel, **kern_kw),
        out_shape=jax.ShapeDtypeStruct((c4o, N * imgp), jnp.float32),
        grid=(n_tiles,),
        in_specs=[x_spec, m_spec, w_spec,
                  pl.BlockSpec((c4o, 1), lambda i: (0, 0)),
                  pl.BlockSpec((c4o, 1), lambda i: (0, 0))],
        out_specs=pl.BlockSpec((c4o, tm), lambda i: (0, i)),
        compiler_params=cparams,
    )(slab, mask, w_stk, scale4, shift4)

    # ---- parity de-interleave back to NCHW (XLA transpose; see TODO above) --
    y6 = y_out.reshape(2, 2, Cout, N, imgp)[..., :img_len]
    y6 = y6.reshape(2, 2, Cout, N, hp, wp)[..., :H, :W]         # (ph,pw,c,n,h,w)
    out = jnp.transpose(y6, (3, 2, 4, 0, 5, 1)).reshape(N, Cout, 2 * H, 2 * W)
    return out


def _reference(x, w, b, gamma, beta):
    """Pure-JAX reference of the PyTorch module (train-mode BN)."""
    wr = jnp.transpose(w, (1, 0, 2, 3))[:, :, ::-1, ::-1]       # flip + swap in/out
    y = lax.conv_general_dilated(
        x, wr, window_strides=(1, 1),
        padding=((1, 2), (1, 2)),                               # K-1-p, K-1-p+out_pad
        lhs_dilation=(2, 2), rhs_dilation=(1, 1),
        dimension_numbers=('NCHW', 'OIHW', 'NCHW'))
    y = y + b[None, :, None, None]
    mean = jnp.mean(y, axis=(0, 2, 3), keepdims=True)
    var = jnp.mean((y - mean) ** 2, axis=(0, 2, 3), keepdims=True)
    y = (y - mean) * lax.rsqrt(var + _EPS)
    y = y * gamma[None, :, None, None] + beta[None, :, None, None]
    return jnp.maximum(y, 0.0)


if __name__ == "__main__":
    key = jax.random.PRNGKey(0)
    k_x, k_w, k_b = jax.random.split(key, 3)

    N, Cin, H, W = 2, 4, 16, 16
    Cout = 8

    x = jax.random.normal(k_x, (N, Cin, H, W), jnp.float32)
    w = jax.random.normal(k_w, (Cin, Cout, 3, 3), jnp.float32) * 0.1
    b = jax.random.normal(k_b, (Cout,), jnp.float32) * 0.1
    gamma = jnp.ones((Cout,), jnp.float32)   # PyTorch BatchNorm2d defaults
    beta = jnp.zeros((Cout,), jnp.float32)

    out = based_module_4(x, w, b, gamma, beta)
    out = jax.block_until_ready(out)
    assert out.shape == (N, Cout, 2 * H, 2 * W), out.shape

    # The kernel stores the activation slab in bfloat16 (perf-review item 4);
    # compare against the f32 reference evaluated on the identically-rounded
    # input so the check isolates algorithmic correctness from that deliberate
    # mixed-precision cast.
    xq = x.astype(jnp.bfloat16).astype(jnp.float32)
    ref = _reference(xq, w, b, gamma, beta)
    if not bool(jnp.allclose(out, ref, atol=2e-3, rtol=2e-3)):
        raise SystemExit("mismatch vs reference")

    print("KERNEL_OK")
</pallas_src>

<mosaic_0001>
module attributes {stable_mosaic.version = 11 : i64} {
  func.func @probe(%arg0: memref<8x128xi32, #tpu.memory_space<vmem>>, %arg1: memref<8x128xi32, #tpu.memory_space<vmem>>) attributes {dimension_semantics = [], scalar_prefetch = 0 : i64, scratch_operands = 0 : i64, tpu.core_type = #tpu.core_type<tc>} {
    %c0 = arith.constant 0 : index
    %c0_0 = arith.constant 0 : index
    %0 = vector.load %arg0[%c0, %c0_0] : memref<8x128xi32, #tpu.memory_space<vmem>>, vector<8x128xi32>
    %c127_i32 = arith.constant 127 : i32
    %1 = tpu.dynamic_rotate %0 by %c127_i32 dim 1 : vector<8x128xi32>, i32 -> vector<8x128xi32>
    %c0_1 = arith.constant 0 : index
    %c0_2 = arith.constant 0 : index
    %2 = vector.load %arg1[%c0_1, %c0_2] : memref<8x128xi32, #tpu.memory_space<vmem>>, vector<8x128xi32>
    tpu.vector_store %arg1[%c0_1, %c0_2], %1 {strides = array<i32>} : memref<8x128xi32, #tpu.memory_space<vmem>>, vector<8x128xi32>,
    return
  }
}

</mosaic_0001>

<bundles_post_ra>
// kernel: tpu_custom_call.1
= control target key start
LH: loop header
LB: loop body
LE: loop exit
PB: predicated region body
PF: predicated region fallthrough
CT: control target
= control target key end

     0   :  { %6 = vsyncpa [#allocation3], 0  ;;  %s128_s0 = inlined_call_operand.hbm [shape: s32[8,128], index: 0, kind: input, shape index: {}]   ;;  %s129_s1 = inlined_call_operand.hbm [shape: s32[8,128], index: 1, kind: output, shape index: {}]  }
   0x1   :  { %7 = vsyncpa [#allocation4], 0  ;;  %s91_s6 = smov [#allocation2]   ;;  %s43_s10 = scalar_lea.hbm %s128_s0, 128 }
   0x2   :  { %s14_s7 = sshll.u32 %s91_s6, 4  ;;  %p44_p0 = scmp.ne.s32.totalorder %s128_s0, %s43_s10  ;;  %s15_s7 = int_to_ptr.vmem [resolvable:$true] %s14_s7 }
   0x3   :  { %p47_p1 = scmp.lt.u32.totalorder %s43_s10, %s128_s0 }
   0x5   :  { %p49_p2 = pnand %p47_p1, %p44_p0 }
   0x7   :  { %52 = shalt.err (!%p49_p2)
}
   0x8   :  { %s53_s15 = scalar_lea.vmem %s15_s7, 128  ;;  %p58_p4 = scmp.lt.s32.totalorder %s15_s7, %s15_s7 }
   0x9   :  { %p54_p3 = scmp.ne.s32.totalorder %s15_s7, %s53_s15  ;;  %p59_p5 = scmp.lt.s32.totalorder %s53_s15, %s53_s15 }
   0xb   :  { %p60_p6 = por %p59_p5, %p58_p4 }
   0xd   :  { %p61_p7 = pnand %p60_p6, %p54_p3 }
   0xf   :  { %64 = shalt.err (!%p61_p7)
}
  0x10   :  { %17 = dma.hbm_to_vmem [thread:$0]  %s128_s0, 128, %s15_s7, [#allocation3]  }
  0x11   :  { %87 = dma.done.wait [#allocation3], 128  }
  0x12   :  { %88 = vsyncadd [#allocation3], 4294967168  ;;  %v21_v0 = vld [vmem:[#allocation2] sm:$0xff]  ;;  %s92_s18 = smov 127   ;;  %s93_s19 = smov [#allocation5]  }
  0x13   :  { %22 = vrot.lane.b32.xlu0 %v21_v0, %s92_s18  ;;  %s31_s20 = sshll.u32 %s93_s19, 4  ;;  %s32_s20 = int_to_ptr.vmem [resolvable:$true] %s31_s20 }
  0x14   :  { %s65_s21 = scalar_lea.vmem %s32_s20, 128  ;;  %p70_p9 = scmp.lt.s32.totalorder %s32_s20, %s32_s20 }
  0x15   :  { %p66_p8 = scmp.ne.s32.totalorder %s32_s20, %s65_s21  ;;  %p71_p10 = scmp.lt.s32.totalorder %s65_s21, %s65_s21 }
  0x17   :  { %p72_p11 = por %p71_p10, %p70_p9 }
  0x19   :  { %p73_p12 = pnand %p72_p11, %p66_p8 }
  0x85   :  { %v23_v1 = vpop.permute.xlu0 %22 }
  0x86   :  { %24 = vst [vmem:[#allocation5] sm:$0xff] %v23_v1 }
  0x87   :  { %76 = shalt.err (!%p73_p12)
}
  0x88   :  { %s77_s0 = scalar_lea.hbm %s129_s1, 128 }
  0x89   :  { %p78_p13 = scmp.ne.s32.totalorder %s129_s1, %s77_s0  ;;  %p81_p0 = scmp.lt.u32.totalorder %s77_s0, %s129_s1 }
  0x8b   :  { %p83_p1 = pnand %p81_p0, %p78_p13 }
  0x8d   :  { %86 = shalt.err (!%p83_p1)
}
  0x8e   :  { %34 = dma.vmem_to_hbm [thread:$0]  %s32_s20, 128, %s129_s1, [#allocation4]  }
  0x8f   :  { %89 = dma.done.wait [#allocation4], 128  }
  0x90   :  { %90 = vsyncadd [#allocation4], 4294967168 }
  0x91   :  { %38 = vsyncpa [#allocation3], 1 }
  0x92   :  { %39 = vsyncpa [#allocation4], 1 }

</bundles_post_ra>
